<compile_context>
chip_gen: v7x
topology: tpu7x:2x2x1
jax: 0.10.0
libtpu: 0.0.40
codegen_flags: <defaults>
</compile_context>

<pallas_src>
import jax
import jax.numpy as jnp
from jax.experimental import pallas as pl
from jax.experimental.pallas import tpu as pltpu

_LANE = 128                      # TPU vreg lane width
_VMEM_BLOCK_BUDGET = 12 << 20    # per-step block budget (double-buffered) -- v7x-safe


def _round_up(x, m):
    return (x + m - 1) // m * m


def transition_kernel(x_ref, w_ref, o_ref):
    """One (batch, H-tile) grid step.

    x_ref : (TH, W, Cp)        activations (native dtype, channels padded to 128-mult)
    w_ref : (Cp, Op)           1x1 conv weight, (in, out), padded -- resident across grid
    o_ref : (TH//2, W//2, Op)  pooled output tile
    """
    TH, W, Cp = x_ref.shape
    Op = w_ref.shape[1]

    # --- 1x1 conv == matmul over channels (MXU). Native-dtype operands, f32 accum. ---
    x = x_ref[...].reshape(TH * W, Cp)
    y = jnp.dot(x, w_ref[...], preferred_element_type=jnp.float32)    # (TH*W, Op) f32
    y = y.reshape(TH, W, Op)

    # --- 2x2 max pool, stride 2, no padding (VPU, f32; downcast only at the store) ---
    # H first: H is an outer (non-vreg) axis, so this is a cheap vreg-pair max and
    # halves the data before the sublane-pair (W) work.
    y = jnp.max(y.reshape(TH // 2, 2, W, Op), axis=1)                  # (TH//2, W, Op)
    # W pool: adjacent sublane pairs.
    y = jnp.max(y.reshape(TH // 2, W // 2, 2, Op), axis=2)             # (TH//2, W//2, Op)

    o_ref[...] = y.astype(o_ref.dtype)


def _pick_tile_h(H, W, Cp, Op, x_itemsize, o_itemsize):
    """Largest multiple-of-8 divisor of H whose double-buffered blocks fit the budget."""
    def cost(th):
        x_blk = th * W * Cp * x_itemsize
        o_blk = (th // 2) * (W // 2) * Op * o_itemsize
        acc = th * W * Op * 4                       # f32 matmul result inside the kernel
        return 2 * (x_blk + o_blk) + acc            # x/o are double-buffered by Pallas
    divisors = [th for th in range(8, H + 1, 8) if H % th == 0]
    if not divisors:
        return H                                    # tiny / odd H: whole image per step
    fitting = [th for th in divisors if cost(th) <= _VMEM_BLOCK_BUDGET]
    return max(fitting) if fitting else min(divisors)


def dense_net_transition_nhwc(x_nhwc, w_co):
    """conv2d(k=1, bias=False) -> max_pool2d(2,2); NHWC in / NHWC out (no-transpose path).

    x_nhwc : (N, H, W, C)
    w_co   : (C, O)   1x1 conv weight, transposed to (in, out)
    returns: (N, H//2, W//2, O)
    """
    N, H, W, C = x_nhwc.shape
    Ci, O = w_co.shape
    assert Ci == C and H % 2 == 0 and W % 2 == 0
    out_dtype = x_nhwc.dtype

    # Lane-dense channels: pad C / O up to multiples of 128 (no-op when already aligned,
    # which is the real-DenseNet design point).
    Cp = _round_up(C, _LANE)
    Op = _round_up(O, _LANE)
    if Cp != C:
        x_nhwc = jnp.pad(x_nhwc, ((0, 0), (0, 0), (0, 0), (0, Cp - C)))
    w = w_co.astype(out_dtype)                       # cast once, in the wrapper
    if Cp != C or Op != O:
        w = jnp.pad(w, ((0, Cp - C), (0, Op - O)))   # zero rows/cols keep math exact

    TH = _pick_tile_h(H, W, Cp, Op,
                      jnp.dtype(x_nhwc.dtype).itemsize, jnp.dtype(out_dtype).itemsize)
    grid = (N, H // TH)

    out = pl.pallas_call(
        transition_kernel,
        out_shape=jax.ShapeDtypeStruct((N, H // 2, W // 2, Op), out_dtype),
        grid=grid,
        in_specs=[
            # (TH, W, Cp) activation tile per grid step.
            pl.BlockSpec((pl.Squeezed(), TH, W, Cp), lambda n, h: (n, h, 0, 0)),
            # Constant index_map -> weight stays resident in VMEM across the whole grid.
            pl.BlockSpec((Cp, Op), lambda n, h: (0, 0)),
        ],
        out_specs=pl.BlockSpec(
            (pl.Squeezed(), TH // 2, W // 2, Op), lambda n, h: (n, h, 0, 0)
        ),
        compiler_params=pltpu.CompilerParams(
            dimension_semantics=("parallel", "parallel"),
            vmem_limit_bytes=32 * 1024 * 1024,
        ),
        # Note: on v7x, pipeline_mode=pl.Buffered(3) on the activation spec could hide
        # per-step overhead once tiles are small; omitted to keep the default 2-deep pipe.
    )(x_nhwc, w)

    return out[..., :O] if Op != O else out          # drop zero-padded output channels


def dense_net_transition(x_nchw, conv_weight):
    """PyTorch-compatible entry: conv2d(k=1, bias=False) -> max_pool2d(2,2), NCHW in/out.

    x_nchw      : (N, C, H, W)
    conv_weight : (O, C, 1, 1)   PyTorch Conv2d weight layout
    returns     : (N, O, H//2, W//2)

    Layout plumbing (NCHW<->NHWC transposes + channel pad/slice) lives here, outside the
    kernel; prefer dense_net_transition_nhwc when activations can stay NHWC end-to-end.
    """
    N, C, H, W = x_nchw.shape
    O = conv_weight.shape[0]
    x_nhwc = jnp.transpose(x_nchw, (0, 2, 3, 1))                # (N, H, W, C)
    w_co = jnp.transpose(conv_weight[:, :, 0, 0], (1, 0))       # (C, O)
    out_nhwc = dense_net_transition_nhwc(x_nhwc, w_co)          # (N, H//2, W//2, O)
    return jnp.transpose(out_nhwc, (0, 3, 1, 2))                # back to NCHW


def _reference(x_nchw, conv_weight):
    # Plain-JAX reference: 1x1 conv via einsum + 2x2/2 max pool.
    N, C, H, W = x_nchw.shape
    O = conv_weight.shape[0]
    y = jnp.einsum("nchw,oc->nohw", x_nchw, conv_weight[:, :, 0, 0])
    y = y.reshape(N, O, H // 2, 2, W // 2, 2)
    return jnp.max(y, axis=(3, 5))


if __name__ == "__main__":
    # Small shapes consistent with the module: N=2, nChannels=4, outChannels=8, H=W=16
    N, C, O, H, W = 2, 4, 8, 16, 16

    key = jax.random.PRNGKey(0)
    kx, kw = jax.random.split(key)

    x = jax.random.normal(kx, (N, C, H, W), dtype=jnp.float32)
    # Deterministic init mimicking PyTorch Conv2d default (kaiming-uniform bound 1/sqrt(fan_in))
    bound = 1.0 / jnp.sqrt(jnp.float32(C * 1 * 1))
    conv_weight = jax.random.uniform(
        kw, (O, C, 1, 1), dtype=jnp.float32, minval=-bound, maxval=bound
    )

    out = dense_net_transition(x, conv_weight)
    out = jax.block_until_ready(out)

    ref = _reference(x, conv_weight)
    assert out.shape == (N, O, H // 2, W // 2), out.shape
    assert jnp.allclose(out, ref, atol=1e-5, rtol=1e-5), "mismatch vs reference"

    print("KERNEL_OK")
</pallas_src>

<mosaic_0001>
module attributes {stable_mosaic.version = 11 : i64} {
  func.func @transition_kernel(%arg0: i32, %arg1: i32, %arg2: memref<1x16x16x128xf32, #tpu.memory_space<vmem>>, %arg3: memref<128x128xf32, #tpu.memory_space<vmem>>, %arg4: memref<1x8x8x128xf32, #tpu.memory_space<vmem>>) attributes {dimension_semantics = [#tpu.dimension_semantics<parallel>, #tpu.dimension_semantics<parallel>], iteration_bounds = array<i64: 2, 1>, scalar_prefetch = 0 : i64, scratch_operands = 0 : i64, tpu.core_type = #tpu.core_type<tc>, window_params = [{transform_indices = @transform_0, window_bounds = array<i64: 1, 16, 16, 128>}, {pipeline_mode = #tpu.pipeline_mode<synchronous>, transform_indices = @transform_1, window_bounds = array<i64: 128, 128>}, {transform_indices = @transform_2, window_bounds = array<i64: 1, 8, 8, 128>}]} {
    %c0 = arith.constant 0 : index
    %c0_0 = arith.constant 0 : index
    %c0_1 = arith.constant 0 : index
    %c0_2 = arith.constant 0 : index
    %0 = vector.load %arg2[%c0, %c0_0, %c0_1, %c0_2] : memref<1x16x16x128xf32, #tpu.memory_space<vmem>>, vector<1x16x16x128xf32>
    %1 = vector.shape_cast %0 : vector<1x16x16x128xf32> to vector<16x16x128xf32>
    %2 = vector.shape_cast %1 : vector<16x16x128xf32> to vector<256x128xf32>
    %c0_3 = arith.constant 0 : index
    %c0_4 = arith.constant 0 : index
    %3 = vector.load %arg3[%c0_3, %c0_4] : memref<128x128xf32, #tpu.memory_space<vmem>>, vector<128x128xf32>
    %cst = arith.constant dense<0.000000e+00> : vector<256x128xf32>
    %4 = tpu.matmul %2, %3, %cst {dimension_numbers = #tpu.dot_dimension_numbers<[1], [0], [0], [1], [0, 0, 1, 1], [], []>} : vector<256x128xf32>, vector<128x128xf32>, vector<256x128xf32> -> vector<256x128xf32>
    %5 = vector.shape_cast %4 : vector<256x128xf32> to vector<16x16x128xf32>
    %6 = vector.shape_cast %5 : vector<16x16x128xf32> to vector<8x2x16x128xf32>
    %cst_5 = arith.constant dense<0xFF800000> : vector<8x16x128xf32>
    %7 = vector.multi_reduction <maximumf>, %6, %cst_5 [1] : vector<8x2x16x128xf32> to vector<8x16x128xf32>
    %8 = vector.shape_cast %7 : vector<8x16x128xf32> to vector<8x8x2x128xf32>
    %cst_6 = arith.constant dense<0xFF800000> : vector<8x8x128xf32>
    %9 = vector.multi_reduction <maximumf>, %8, %cst_6 [2] : vector<8x8x2x128xf32> to vector<8x8x128xf32>
    %c0_7 = arith.constant 0 : index
    %c0_8 = arith.constant 0 : index
    %c0_9 = arith.constant 0 : index
    %c0_10 = arith.constant 0 : index
    %10 = vector.load %arg4[%c0_7, %c0_8, %c0_9, %c0_10] : memref<1x8x8x128xf32, #tpu.memory_space<vmem>>, vector<1x8x8x128xf32>
    %11 = vector.shape_cast %10 : vector<1x8x8x128xf32> to vector<8x8x128xf32>
    %12 = vector.shape_cast %9 : vector<8x8x128xf32> to vector<1x8x8x128xf32>
    tpu.vector_store %arg4[%c0_7, %c0_8, %c0_9, %c0_10], %12 {strides = array<i32>} : memref<1x8x8x128xf32, #tpu.memory_space<vmem>>, vector<1x8x8x128xf32>,
    return
  }
  func.func @transform_0(%arg0: i32, %arg1: i32) -> (i32, i32, i32, i32) {
    %c0_i32 = arith.constant 0 : i32
    %c0_i32_0 = arith.constant 0 : i32
    %c0_i32_1 = arith.constant 0 : i32
    return %arg0, %arg1, %c0_i32, %c0_i32_0 : i32, i32, i32, i32
  }
  func.func @transform_1(%arg0: i32, %arg1: i32) -> (i32, i32) {
    %c0_i32 = arith.constant 0 : i32
    %c0_i32_0 = arith.constant 0 : i32
    %c0_i32_1 = arith.constant 0 : i32
    return %c0_i32, %c0_i32_0 : i32, i32
  }
  func.func @transform_2(%arg0: i32, %arg1: i32) -> (i32, i32, i32, i32) {
    %c0_i32 = arith.constant 0 : i32
    %c0_i32_0 = arith.constant 0 : i32
    %c0_i32_1 = arith.constant 0 : i32
    return %arg0, %arg1, %c0_i32, %c0_i32_0 : i32, i32, i32, i32
  }
}

</mosaic_0001>

<bundles_post_ra>
// kernel: tpu_custom_call.1
= control target key start
LH: loop header
LB: loop body
LE: loop exit
PB: predicated region body
PF: predicated region fallthrough
CT: control target
= control target key end

     0   :  { %7 = vsyncpa [#allocation3], 0  ;;  %s2600_s0 = inlined_call_operand.hbm [shape: f32[2,16,16,128], index: 0, kind: input, shape index: {}]   ;;  %s2601_s1 = inlined_call_operand.hbm [shape: f32[128,128], index: 1, kind: input, shape index: {}]   ;;  %s2602_s2 = inlined_call_operand.hbm [shape: f32[2,8,8,128], index: 2, kind: output, shape index: {}]  }
   0x1   :  { %9 = vsyncpa [#allocation3 + $0x1], 0 }
   0x2   :  { %10 = vsyncpa [#allocation6], 0 }
   0x3   :  { %11 = vsyncpa [#allocation4], 0 }
   0x4   :  { %13 = vsyncpa [#allocation4 + $0x1], 0  ;;  %s1986_s9 = smov 0   ;;  %s1988_s10 = smov 0  }
   0x5   :  { %s1990_s11 = smov 0   ;;  %s1992_s12 = smov 0  }
   0x6   :  { %s1994_s13 = smov 0   ;;  %s1996_s14 = smov 0  }
   0x7 LB: > { %s1544_s15 = sadd.s32 4294967295, %s1961_s14   ;;  %s1545_s16 = sadd.s32 4294967294, %s1961_s14   ;;  %s1961_s14 = sphi %s1996_s14, %s19_s14   ;;  %s1957_s13 = sphi %s1994_s13, %s2626_s13   ;;  %s1953_s12 = sphi %s1992_s12, %s2625_s12   ;;  %s1949_s11 = sphi %s1990_s11, %s2624_s11   ;;  %s1945_s10 = sphi %s1988_s10, %s2623_s10   ;;  %s1941_s9 = sphi %s1986_s9, %s2622_s9  }
   0x8   : > { %p53_p0 = scmp.ne.s32.totalorder %s1945_s10, %s1941_s9  ;;  %p2020_p1 = scmp.eq.s32.totalorder %s1544_s15, 0 }
   0x9   : > { %p2024_p2 = scmp.eq.s32.totalorder %s1544_s15, 1  ;;  %p106_p3 = scmp.eq.s32.totalorder %s1545_s16, 1 }
   0xa   : > { %s2607_s17 = scalar_select %p2020_p1, 1, 0 }
   0xb   : > { %s2608_s18 = scalar_select %p2024_p2, 1, 0 }
   0xc   : > { %p2030_p4 = por %p2020_p1, %p53_p0  ;;  %p1546_p5 = scmp.ge.s32.totalorder %s1961_s14, 1 }
   0xd   : > { %p2035_p6 = por %p106_p3, %p53_p0  ;;  %p113_p7 = scmp.lt.s32.totalorder %s1961_s14, 3 }
   0xe   : > { %s2609_s19 = scalar_select %p2030_p4, 1, 0 }
   0xf   : > { %s2610_s20 = scalar_select %p2035_p6, 1, 0 }
  0x10   : > { %p2040_p8 = pnand %p1546_p5, %p113_p7  ;;  %s1963_s22 = smov [#allocation5]  }
  0x11   : > { %s125_s23 = sshll.u32 %s1963_s22, 4  ;;  %s31_s25 = sadd.s32 1, %s1957_s13  ;;  %s126_s23 = int_to_ptr.vmem [resolvable:$true] %s125_s23 }
  0x12   : > { %s2611_s21 = scalar_select %p2040_p8, 1, 0 }
  0x13   : > { %p1747_p9 = pneg %p2040_p8  ;;  %s1817_s28 = scalar_lea.hbm %s2601_s1, 2048 }
  0x14   : > { %p1818_p12 = scmp.ne.s32.totalorder %s2601_s1, %s1817_s28  ;;  %p1824_p5 = scmp.lt.u32.totalorder %s1817_s28, %s2601_s1 }
  0x15   : > { %p2049_p11 = pnand %p1747_p9, %p2020_p1 }
  0x17   : > { %p1819_p13 = pneg %p2049_p11 }
  0x19   : > { %p1820_p0 = pnand %p1819_p13, %p1818_p12 }
  0x1b   : > { %p1821_p3 = pneg %p1820_p0 }
  0x1d   : > { %p1826_p7 = pnand %p1824_p5, %p1821_p3 }
  0x1f   : > { %1829 = shalt.err (!%p1826_p7)
}
  0x20   : > { %s1830_s5 = scalar_lea.vmem %s126_s23, 2048  ;;  %p1838_p1 = scmp.lt.s32.totalorder %s126_s23, %s126_s23 }
  0x21   : > { %p1831_p9 = scmp.ne.s32.totalorder %s126_s23, %s1830_s5  ;;  %p1839_p4 = scmp.lt.s32.totalorder %s1830_s5, %s1830_s5 }
  0x23   : > { %p1833_p10 = pnand %p1831_p9, %p1819_p13  ;;  %p1840_p8 = por %p1839_p4, %p1838_p1 }
  0x25   : > { %p1834_p6 = pneg %p1833_p10 }
  0x27   : > { %p1841_p2 = pnand %p1840_p8, %p1834_p6 }
  0x29   : > { %1844 = shalt.err (!%p1841_p2)
}
  0x2a   : > { %s1964_s6 = smov 128   ;;  %s1965_s7 = smov 8  }
  0x2b   : > { %1750 = dma.hbm_to_vmem [thread:$0]  (!%p2049_p11), %s2601_s1, 2048, %s126_s23, [#allocation6], %s1964_s6, %s1964_s6, %s1965_s7  }
  0x2c   : > { %p33_p1 = scmp.ge.s32.totalorder %s31_s25, 2  ;;  %s40_s16 = sadd.s32 1, %s1949_s11 }
  0x2d   : > { %p47_p2 = scmp.ne.s32.totalorder %s1949_s11, %s1945_s10  ;;  %p48_p4 = scmp.eq.s32.totalorder %s1961_s14, 0 }
  0x2e   : > { %s2628_s25 = smov (%p33_p1, %s31_s25), 0  ;;  %p2614_p8 = scmp.ne.s32.totalorder %s2608_s18, 0 }
  0x2f   : > { %p2079_p6 = por %p48_p4, %p47_p2  ;;  %s35_s26 = ssub.s32 %s1957_s13, %s2628_s25 }
  0x30   : > { %p2085_p10 = por %p2614_p8, %p47_p2  ;;  %p1760_p12 = scmp.lt.s32.totalorder %s1961_s14, 2 }
  0x31   : > { %p38_p11 = scmp.eq.s32.totalorder %s35_s26, 0  ;;  %s139_s23 = sand.u32 1, %s1949_s11  }
  0x32   : > { %s1549_s27 = sshll.u32 %s139_s23, 8  ;;  %s1561_s29 = sshll.u32 %s1957_s13, 12 }
  0x33   : > { %s2094_s28 = scalar_select %p38_p11, %s1949_s11, %s40_s16  }
  0x34   : > { %s2100_s4 = scalar_lea.hbm %s2600_s0, %s1561_s29  ;;  %s143_s18 = scalar_lea.vmem [#allocation2], %s1549_s27 }
  0x35   : > { %s153_s5 = sshll.u32 %s143_s18, 4  ;;  %p2106_p13 = pnand %p1760_p12, %p2079_p6  ;;  %s2102_s5 = int_to_ptr.vmem [resolvable:$true] %s153_s5 }
  0x36   : > { %s2110_s15 = scalar_lea.sflag [#allocation3], %s139_s23  ;;  %s1845_s16 = scalar_lea.hbm %s2100_s4, 4096 }
  0x37   : > { %p1846_p0 = scmp.ne.s32.totalorder %s2100_s4, %s1845_s16  ;;  %p1847_p3 = pneg %p2106_p13 }
  0x38   : > { %s1850_s22 = scalar_lea.hbm %s2600_s0, 8192  ;;  %p1851_p9 = scmp.lt.u32.totalorder %s2100_s4, %s2600_s0 }
  0x39   : > { %p1848_p5 = pnand %p1847_p3, %p1846_p0  ;;  %p1852_p1 = scmp.lt.u32.totalorder %s1850_s22, %s1845_s16 }
  0x3a   : > { %p1854_p4 = scmp.lt.u32.totalorder %s1845_s16, %s2100_s4 }
  0x3b   : > { %p1849_p7 = pneg %p1848_p5  ;;  %p1853_p2 = por %p1852_p1, %p1851_p9 }
  0x3d   : > { %p1855_p6 = por %p1854_p4, %p1853_p2 }
  0x3f   : > { %p1856_p8 = pnand %p1855_p6, %p1849_p7 }
  0x41   : > { %1859 = shalt.err (!%p1856_p8)
}
  0x42   : > { %s1860_s23 = scalar_lea.vmem %s2102_s5, 4096  ;;  %s1966_s3 = smov [#allocation2]  }
  0x43   : > { %p1861_p12 = scmp.ne.s32.totalorder %s2102_s5, %s1860_s23  ;;  %s1865_s18 = sshll.u32 %s1966_s3, 4  ;;  %s1866_s18 = int_to_ptr.vmem [resolvable:$false] %s1865_s18 }
  0x44   : > { %s1867_s26 = scalar_lea.vmem %s1866_s18, 8192  ;;  %p1868_p5 = scmp.lt.s32.totalorder %s2102_s5, %s1866_s18 }
  0x45   : > { %p1863_p11 = pnand %p1861_p12, %p1847_p3  ;;  %p1869_p9 = scmp.lt.s32.totalorder %s1867_s26, %s1860_s23 }
  0x47   : > { %p1864_p0 = pneg %p1863_p11  ;;  %p1870_p1 = por %p1869_p9, %p1868_p5 }
  0x49   : > { %p1871_p2 = pnand %p1870_p1, %p1864_p0 }
  0x4b   : > { %1874 = shalt.err (!%p1871_p2)
}
  0x4c   : > { %1754 = dma.hbm_to_vmem [thread:$0]  (!%p2106_p13), %s2100_s4, 4096, %s2102_s5, %s2110_s15, %s1964_s6, %s1964_s6, %s1965_s7  }
  0x4d   : > { %p2617_p3 = scmp.ne.s32.totalorder %s2611_s21, 0 }
  0x4e   : > { %s2144_s16 = sand.u32 (!%p2617_p3), 1, %s1945_s10   ;;  %p2618_p7 = scmp.ne.s32.totalorder (!%p2617_p3), %s2609_s19, 0 }
  0x4f   : > { %165 = sbr.rel (%p2617_p3) target bundleno = 512 (0x200), region = 28  ;;  %s1553_s27 = sshll.u32 (!%p2617_p3), %s2144_s16, 8 }
  0x50   : > { %s168_s22 = scalar_lea.sflag (!%p2617_p3), [#allocation3], %s2144_s16  ;;  %s2148_s29 = scalar_lea.vmem (!%p2617_p3), [#allocation2], %s1553_s27 }
  0x56   : > { %1928 = dma.done.wait (%p2618_p7), %s168_s22, 4096  }
  0x57   : > { %1930 = vsyncadd (%p2618_p7), %s168_s22, 4294963200  ;;  %p2619_p13 = scmp.ne.s32.totalorder %s2607_s17, 0 }
  0x59   : > { %1932 = dma.done.wait (%p2619_p13), [#allocation6], 2048  }
  0x5a   : > { %1934 = vsyncadd (%p2619_p13), [#allocation6], 4294965248  ;;  %v230_v0 = vld [vmem:[#allocation5] sm:$0xff]  ;;  %v231_v1 = vld [vmem:[#allocation5 + $0x8] sm:$0xff]  ;;  %v1967_v56 = vmov 1983009808   ;;  %v507_v58 = vlaneseq }
  0x5b   : > { %v232_v2 = vld [vmem:[#allocation5 + $0x10] sm:$0xff]  ;;  %v1691_v3 = vpack.c.bf16 %v231_v1, %v230_v0  ;;  %v233_v4 = vld [vmem:[#allocation5 + $0x18] sm:$0xff]  ;;  %v234_v6 = vld [vmem:[#allocation5 + $0x20] sm:$0xff]  ;;  %v505_v57 = vunpack.c.l.s4 %v1967_v56  ;;  %vm839_vm0 = vcmask 1041408   ;;  %vm1352_vm1 = vcmask 1041409   ;;  %s1555_s17 = sshll.u32 %s2144_s16, 6 }
  0x5c   : > { %v1695_v5 = vpack.c.bf16 %v233_v4, %v232_v2  ;;  %v235_v7 = vld [vmem:[#allocation5 + $0x28] sm:$0xff]  ;;  %v198_v9 = vld [vmem:[%s2148_s29] sm:$0xff]  ;;  %v236_v11 = vld [vmem:[#allocation5 + $0x30] sm:$0xff]  ;;  %v508_v60 = vshrl.u32 %v507_v58, 7  ;;  %vm1354_vm2 = vcmask 1042434   ;;  %vm1356_vm3 = vcmask 1043459  }
  0x5d   : > { %1692 = vmatprep.subr.bf16.mxu0 %v1691_v3  ;;  %1723 = vmatprep.subr.bf16.mxu1 %v1691_v3  ;;  %v1699_v8 = vpack.c.bf16 %v235_v7, %v234_v6  ;;  %v214_v10 = vld [vmem:[%s2148_s29 + $0x80] sm:$0xff]  ;;  %v237_v12 = vld [vmem:[#allocation5 + $0x38] sm:$0xff]  ;;  %v239_v15 = vld [vmem:[#allocation5 + $0x48] sm:$0xff]  ;;  %v506_v59 = vunpack.c.0.s8 %v505_v57  ;;  %vm1358_vm4 = vcmask 1044484   ;;  %vm1360_vm5 = vcmask 1045509   ;;  %s2323_s19 = scalar_lea.vmem [#allocation7], %s1555_s17 }
  0x5e   : > { %1694 = vmatpush3.bf16.msra.mxu0 %v1691_v3  ;;  %1731 = vmatpush3.bf16.msra.mxu1 %v1691_v3  ;;  %v1703_v13 = vpack.c.bf16 %v237_v12, %v236_v11  ;;  %v238_v14 = vld [vmem:[#allocation5 + $0x40] sm:$0xff]  ;;  %v240_v17 = vld [vmem:[#allocation5 + $0x50] sm:$0xff]  ;;  %v241_v18 = vld [vmem:[#allocation5 + $0x58] sm:$0xff]  ;;  %vm1362_vm6 = vcmask 1046534   ;;  %vm1364_vm7 = vcmask 1047559   ;;  %s1562_s21 = sshll.u32 %s1953_s12, 10 }
  0x5f   : > { %1696 = vmatprep.subr.bf16.mxu0 %v1695_v5  ;;  %1724 = vmatprep.subr.bf16.mxu1 %v1695_v5  ;;  %v1707_v16 = vpack.c.bf16 %v239_v15, %v238_v14  ;;  %v1711_v19 = vpack.c.bf16 %v241_v18, %v240_v17  ;;  %v242_v20 = vld [vmem:[#allocation5 + $0x60] sm:$0xff]  ;;  %v243_v21 = vld [vmem:[#allocation5 + $0x68] sm:$0xff]  ;;  %v244_v23 = vld [vmem:[#allocation5 + $0x70] sm:$0xff]  ;;  %v2190_v1 = vsub.s32 %v506_v59, %v508_v60  ;;  %s1447_s6 = sshll.u32 %s2323_s19, 4  ;;  %s2546_s5 = scalar_lea.hbm %s2602_s2, %s1562_s21  ;;  %s2548_s6 = int_to_ptr.vmem [resolvable:$true] %s1447_s6 }
  0x60   : > { %1643 = vmatprep.mubr.f32.mxu0 %v198_v9  ;;  %1667 = vmatprep.mubr.f32.mxu1 %v214_v10  ;;  %v1715_v22 = vpack.c.bf16 %v243_v21, %v242_v20  ;;  %v245_v24 = vld [vmem:[#allocation5 + $0x78] sm:$0xff]  ;;  %v199_v26 = vld [vmem:[%s2148_s29 + $0x8] sm:$0xff]  ;;  %v200_v28 = vld [vmem:[%s2148_s29 + $0x10] sm:$0xff]  ;;  %s1432_s12 = scalar_lea.sflag [#allocation4], %s2144_s16  ;;  %s1875_s8 = scalar_lea.vmem %s2548_s6, 1024 }
  0x61   : > { %v1719_v25 = vpack.c.bf16 %v245_v24, %v244_v23  ;;  %v215_v27 = vld [vmem:[%s2148_s29 + $0x88] sm:$0xff]  ;;  %v216_v29 = vld [vmem:[%s2148_s29 + $0x90] sm:$0xff]  ;;  %v201_v30 = vld [vmem:[%s2148_s29 + $0x18] sm:$0xff]  ;;  %p1876_p4 = scmp.ne.s32.totalorder %s2548_s6, %s1875_s8  ;;  %s1968_s15 = smov [#allocation7]  }
  0x62   : > { %1698 = vmatpush3.bf16.msra.mxu0 %v1695_v5  ;;  %1732 = vmatpush3.bf16.msra.mxu1 %v1695_v5  ;;  %v217_v31 = vld [vmem:[%s2148_s29 + $0x98] sm:$0xff]  ;;  %v202_v32 = vld [vmem:[%s2148_s29 + $0x20] sm:$0xff]  ;;  %v203_v34 = vld [vmem:[%s2148_s29 + $0x28] sm:$0xff]  ;;  %s1879_s30 = sshll.u32 %s1968_s15, 4  ;;  %s1880_s30 = int_to_ptr.vmem [resolvable:$false] %s1879_s30 }
  0x63   : > { %1700 = vmatprep.subr.bf16.mxu0 %v1699_v8  ;;  %1725 = vmatprep.subr.bf16.mxu1 %v1699_v8  ;;  %v218_v33 = vld [vmem:[%s2148_s29 + $0xa0] sm:$0xff]  ;;  %v219_v35 = vld [vmem:[%s2148_s29 + $0xa8] sm:$0xff]  ;;  %v204_v36 = vld [vmem:[%s2148_s29 + $0x30] sm:$0xff]  ;;  %p1877_p6 = pnand %p1876_p4, %p2085_p10  ;;  %s1881_s23 = scalar_lea.vmem %s1880_s30, 2048 }
  0x64   : > { %v220_v37 = vld [vmem:[%s2148_s29 + $0xb0] sm:$0xff]  ;;  %v205_v38 = vld [vmem:[%s2148_s29 + $0x38] sm:$0xff]  ;;  %v206_v40 = vld [vmem:[%s2148_s29 + $0x40] sm:$0xff]  ;;  %p1882_p12 = scmp.lt.s32.totalorder %s2548_s6, %s1880_s30  ;;  %p1883_p11 = scmp.lt.s32.totalorder %s1881_s23, %s1875_s8 }
  0x65   : > { %v221_v39 = vld [vmem:[%s2148_s29 + $0xb8] sm:$0xff]  ;;  %v222_v41 = vld [vmem:[%s2148_s29 + $0xc0] sm:$0xff]  ;;  %v207_v42 = vld [vmem:[%s2148_s29 + $0x48] sm:$0xff]  ;;  %p1878_p8 = pneg %p1877_p6 }
  0x66   : > { %1702 = vmatpush3.bf16.msra.mxu0 %v1699_v8  ;;  %1733 = vmatpush3.bf16.msra.mxu1 %v1699_v8  ;;  %v223_v43 = vld [vmem:[%s2148_s29 + $0xc8] sm:$0xff]  ;;  %v208_v44 = vld [vmem:[%s2148_s29 + $0x50] sm:$0xff]  ;;  %v209_v46 = vld [vmem:[%s2148_s29 + $0x58] sm:$0xff]  ;;  %p1884_p0 = por %p1883_p11, %p1882_p12 }
  0x67   : > { %1704 = vmatprep.subr.bf16.mxu0 %v1703_v13  ;;  %1726 = vmatprep.subr.bf16.mxu1 %v1703_v13  ;;  %v224_v45 = vld [vmem:[%s2148_s29 + $0xd0] sm:$0xff]  ;;  %v225_v47 = vld [vmem:[%s2148_s29 + $0xd8] sm:$0xff]  ;;  %v210_v48 = vld [vmem:[%s2148_s29 + $0x60] sm:$0xff] }
  0x68   : > { %v226_v49 = vld [vmem:[%s2148_s29 + $0xe0] sm:$0xff]  ;;  %v211_v50 = vld [vmem:[%s2148_s29 + $0x68] sm:$0xff]  ;;  %v212_v52 = vld [vmem:[%s2148_s29 + $0x70] sm:$0xff]  ;;  %p1885_p5 = pnand %p1884_p0, %p1878_p8 }
  0x69   : > { %v227_v51 = vld [vmem:[%s2148_s29 + $0xe8] sm:$0xff]  ;;  %v228_v53 = vld [vmem:[%s2148_s29 + $0xf0] sm:$0xff]  ;;  %v213_v54 = vld [vmem:[%s2148_s29 + $0x78] sm:$0xff] }
  0x6a   : > { %1706 = vmatpush3.bf16.msra.mxu0 %v1703_v13  ;;  %1734 = vmatpush3.bf16.msra.mxu1 %v1703_v13  ;;  %v229_v55 = vld [vmem:[%s2148_s29 + $0xf8] sm:$0xff] }
  0x6b   : > { %1708 = vmatprep.subr.bf16.mxu0 %v1707_v16  ;;  %1727 = vmatprep.subr.bf16.mxu1 %v1707_v16 }
  0x6e   : > { %1710 = vmatpush3.bf16.msra.mxu0 %v1707_v16  ;;  %1735 = vmatpush3.bf16.msra.mxu1 %v1707_v16 }
  0x6f   : > { %1712 = vmatprep.subr.bf16.mxu0 %v1711_v19  ;;  %1728 = vmatprep.subr.bf16.mxu1 %v1711_v19 }
  0x72   : > { %1714 = vmatpush3.bf16.msra.mxu0 %v1711_v19  ;;  %1736 = vmatpush3.bf16.msra.mxu1 %v1711_v19 }
  0x73   : > { %1716 = vmatprep.subr.bf16.mxu0 %v1715_v22  ;;  %1729 = vmatprep.subr.bf16.mxu1 %v1715_v22 }
  0x76   : > { %1718 = vmatpush3.bf16.msra.mxu0 %v1715_v22  ;;  %1737 = vmatpush3.bf16.msra.mxu1 %v1715_v22 }
  0x77   : > { %1720 = vmatprep.subr.bf16.mxu0 %v1719_v25  ;;  %1730 = vmatprep.subr.bf16.mxu1 %v1719_v25 }
  0x7a   : > { %1722 = vmatpush3.bf16.msra.mxu0 %v1719_v25  ;;  %1738 = vmatpush3.bf16.msra.mxu1 %v1719_v25 }
  0x7d   : > { %1644 = vmatmul.mubr.f32.vlgmr.msra.gmra.mrb[0].mxu0 %v199_v26  ;;  %1668 = vmatmul.mubr.f32.vlgmr.msra.gmra.mrb[0].mxu1 %v215_v27 }
  0x7e   : > { %1646 = vmatprep.mubr.f32.mxu0 %v200_v28  ;;  %1670 = vmatprep.mubr.f32.mxu1 %v216_v29 }
  0x81   : > { %1647 = vmatmul.mubr.f32.gmra.mrb[2].mxu0 %v201_v30  ;;  %1671 = vmatmul.mubr.f32.gmra.mrb[2].mxu1 %v217_v31 }
  0x82   : > { %1649 = vmatprep.mubr.f32.mxu0 %v202_v32  ;;  %1673 = vmatprep.mubr.f32.mxu1 %v218_v33 }
  0x85   : > { %1650 = vmatmul.mubr.f32.gmra.mrb[4].mxu0 %v203_v34  ;;  %1674 = vmatmul.mubr.f32.gmra.mrb[4].mxu1 %v219_v35 }
  0x86   : > { %1652 = vmatprep.mubr.f32.mxu0 %v204_v36  ;;  %1676 = vmatprep.mubr.f32.mxu1 %v220_v37 }
  0x89   : > { %1653 = vmatmul.mubr.f32.gmra.mrb[6].mxu0 %v205_v38  ;;  %1677 = vmatmul.mubr.f32.gmra.mrb[6].mxu1 %v221_v39 }
  0x8a   : > { %1655 = vmatprep.mubr.f32.mxu0 %v206_v40  ;;  %1679 = vmatprep.mubr.f32.mxu1 %v222_v41 }
  0x8d   : > { %1656 = vmatmul.mubr.f32.gmra.mrb[8].mxu0 %v207_v42  ;;  %1680 = vmatmul.mubr.f32.gmra.mrb[8].mxu1 %v223_v43 }
  0x8e   : > { %1658 = vmatprep.mubr.f32.mxu0 %v208_v44  ;;  %1682 = vmatprep.mubr.f32.mxu1 %v224_v45 }
  0x91   : > { %1659 = vmatmul.mubr.f32.gmra.mrb[10].mxu0 %v209_v46  ;;  %1683 = vmatmul.mubr.f32.gmra.mrb[10].mxu1 %v225_v47 }
  0x92   : > { %1661 = vmatprep.mubr.f32.mxu0 %v210_v48  ;;  %1685 = vmatprep.mubr.f32.mxu1 %v226_v49 }
  0x95   : > { %1662 = vmatmul.mubr.f32.gmra.mrb[12].mxu0 %v211_v50  ;;  %1686 = vmatmul.mubr.f32.gmra.mrb[12].mxu1 %v227_v51 }
  0x96   : > { %1664 = vmatprep.mubr.f32.mxu0 %v212_v52  ;;  %1688 = vmatprep.mubr.f32.mxu1 %v228_v53 }
  0x99   : > { %1665 = vmatmul.mubr.f32.gmra.mrb[14].mxu0 %v213_v54  ;;  %1689 = vmatmul.mubr.f32.gmra.mrb[14].mxu1 %v229_v55 }
 0x150   : > { %v1645_v61 = vpop.f32.mrb[0].mxu0  ;;  %v1669_v62 = vpop.f32.mrb[0].mxu1 }
 0x151   : > { %v312_v63 = vpop.f32.mrb[1].mxu0  ;;  %v392_v0 = vpop.f32.mrb[1].mxu1 }
 0x154   : > { %v1648_v2 = vpop.f32.mrb[2].mxu0  ;;  %v1672_v3 = vpop.f32.mrb[2].mxu1 }
 0x155   : > { %v472_v4 = vmax.f32 %v1645_v61, %v1648_v2  ;;  %v480_v5 = vmax.f32 %v1669_v62, %v1672_v3  ;;  %v322_v6 = vpop.f32.mrb[3].mxu0  ;;  %v402_v7 = vpop.f32.mrb[3].mxu1 }
 0x156   : > { %v471_v8 = vmax.f32 %v312_v63, %v322_v6  ;;  %v2192_v9 = vmax.f32 %v392_v0, %v402_v7 }
 0x157   : > { %v520_v10 = vcombine.high %v472_v4, %v472_v4  ;;  %v527_v11 = vrot.slane %v472_v4, %v2190_v1  ;;  %v656_v12 = vcombine.high %v480_v5, %v480_v5  ;;  %v663_v13 = vrot.slane %v480_v5, %v2190_v1 }
 0x158   : > { %v503_v14 = vcombine.high %v471_v8, %v471_v8  ;;  %v2197_v15 = vrot.slane %v471_v8, %v2190_v1  ;;  %v639_v16 = vcombine.high %v2192_v9, %v2192_v9  ;;  %v2203_v17 = vrot.slane %v2192_v9, %v2190_v1  ;;  %v2205_v18 = vpop.f32.mrb[4].mxu0  ;;  %v2207_v19 = vpop.f32.mrb[4].mxu1 }
 0x159   : > { %v534_v20 = vrot.slane %v520_v10, %v2190_v1  ;;  %v535_v21 = vcombine.high %v527_v11, %v527_v11  ;;  %v868_v22 = vsel %vm839_vm0, %v527_v11, -inf  ;;  %v670_v23 = vrot.slane %v656_v12, %v2190_v1  ;;  %v2212_v24 = vpop.f32.mrb[5].mxu0  ;;  %v2214_v25 = vpop.f32.mrb[5].mxu1 }
 0x15a   : > { %v869_v26 = vrot.slane %v868_v22, 4  ;;  %v671_v27 = vcombine.high %v663_v13, %v663_v13  ;;  %v1092_v28 = vsel %vm839_vm0, %v663_v13, -inf  ;;  %v2218_v29 = vrot.slane %v503_v14, %v2190_v1 }
 0x15b   : > { %v536_v30 = vcombine.high %v534_v20, %v534_v20  ;;  %v875_v31 = vsel %vm839_vm0, %v535_v21, -inf  ;;  %v882_v32 = vsel %vm839_vm0, %v534_v20, -inf  ;;  %v672_v33 = vcombine.high %v670_v23, %v670_v23 }
 0x15c   : > { %v870_v34 = vmax.f32 %v868_v22, %v869_v26  ;;  %v876_v35 = vrot.slane %v875_v31, 4  ;;  %v883_v36 = vrot.slane %v882_v32, 4  ;;  %v1093_v37 = vrot.slane %v1092_v28, 4  ;;  %v2222_v38 = vpop.f32.mrb[6].mxu0  ;;  %v2224_v39 = vpop.f32.mrb[6].mxu1 }
 0x15d   : > { %v889_v40 = vsel %vm839_vm0, %v536_v30, -inf  ;;  %v1099_v41 = vsel %vm839_vm0, %v671_v27, -inf  ;;  %v1106_v42 = vsel %vm839_vm0, %v670_v23, -inf  ;;  %v1113_v43 = vsel %vm839_vm0, %v672_v33, -inf  ;;  %v2230_v44 = vpop.f32.mrb[7].mxu0  ;;  %v2232_v45 = vpop.f32.mrb[7].mxu1 }
 0x15e   : > { %v871_v46 = vrot.slane %v870_v34, 2  ;;  %v877_v47 = vmax.f32 %v875_v31, %v876_v35  ;;  %v884_v48 = vmax.f32 %v882_v32, %v883_v36  ;;  %v890_v49 = vrot.slane %v889_v40, 4 }
 0x15f   : > { %v1094_v50 = vmax.f32 %v1092_v28, %v1093_v37  ;;  %v1100_v51 = vrot.slane %v1099_v41, 4  ;;  %v1107_v52 = vrot.slane %v1106_v42, 4  ;;  %v1114_v53 = vrot.slane %v1113_v43, 4 }
 0x160   : > { %v872_v54 = vmax.f32 %v870_v34, %v871_v46  ;;  %v878_v55 = vrot.slane %v877_v47, 2  ;;  %v885_v56 = vrot.slane %v884_v48, 2  ;;  %v891_v57 = vmax.f32 %v889_v40, %v890_v49  ;;  %v2234_v58 = vpop.f32.mrb[8].mxu0  ;;  %v2236_v59 = vpop.f32.mrb[8].mxu1 }
 0x161   : > { %v1095_v60 = vrot.slane %v1094_v50, 2  ;;  %v1101_v61 = vmax.f32 %v1099_v41, %v1100_v51  ;;  %v1108_v62 = vmax.f32 %v1106_v42, %v1107_v52  ;;  %v1115_v63 = vmax.f32 %v1113_v43, %v1114_v53  ;;  %v2238_v0 = vpop.f32.mrb[9].mxu0  ;;  %v2240_v2 = vpop.f32.mrb[9].mxu1 }
 0x162   : > { %v873_v3 = vrot.slane %v872_v54, 1  ;;  %v879_v4 = vmax.f32 %v877_v47, %v878_v55  ;;  %v886_v5 = vmax.f32 %v884_v48, %v885_v56  ;;  %v892_v6 = vrot.slane %v891_v57, 2 }
 0x163   : > { %v1096_v7 = vmax.f32 %v1094_v50, %v1095_v60  ;;  %v1102_v8 = vrot.slane %v1101_v61, 2  ;;  %v1109_v10 = vrot.slane %v1108_v62, 2  ;;  %v1116_v11 = vrot.slane %v1115_v63, 2 }
 0x164   : > { %v2242_v12 = vmax.f32 %v872_v54, %v873_v3  ;;  %v880_v13 = vrot.slane %v879_v4, 1  ;;  %v887_v14 = vrot.slane %v886_v5, 1  ;;  %v893_v20 = vmax.f32 %v891_v57, %v892_v6  ;;  %v2244_v21 = vpop.f32.mrb[10].mxu0  ;;  %v2246_v22 = vpop.f32.mrb[10].mxu1 }
 0x165   : > { %v1097_v23 = vrot.slane %v1096_v7, 1  ;;  %v1103_v26 = vmax.f32 %v1101_v61, %v1102_v8  ;;  %v1110_v27 = vmax.f32 %v1108_v62, %v1109_v10  ;;  %v1117_v28 = vmax.f32 %v1115_v63, %v1116_v11  ;;  %v2248_v30 = vpop.f32.mrb[11].mxu0  ;;  %v2250_v31 = vpop.f32.mrb[11].mxu1 }
 0x166   : > { %v2252_v32 = vmax.f32 %v879_v4, %v880_v13  ;;  %v2254_v33 = vmax.f32 %v886_v5, %v887_v14  ;;  %v894_v34 = vrot.slane %v893_v20, 1  ;;  %v518_v35 = vcombine.high %v2197_v15, %v2197_v15 }
 0x167   : > { %v2258_v36 = vmax.f32 %v1096_v7, %v1097_v23  ;;  %v1104_v37 = vrot.slane %v1103_v26, 1  ;;  %v1111_v40 = vrot.slane %v1110_v27, 1  ;;  %v1118_v41 = vrot.slane %v1117_v28, 1 }
 0x168   : > { %v2260_v42 = vmax.f32 %v893_v20, %v894_v34  ;;  %v519_v43 = vcombine.high %v2218_v29, %v2218_v29  ;;  %v840_v46 = vsel %vm839_vm0, %v2197_v15, -inf  ;;  %v847_v47 = vsel %vm839_vm0, %v518_v35, -inf  ;;  %v2267_v48 = vpop.f32.mrb[12].mxu0  ;;  %v2269_v49 = vpop.f32.mrb[12].mxu1 }
 0x169   : > { %v2271_v50 = vmax.f32 %v1103_v26, %v1104_v37  ;;  %v2273_v51 = vmax.f32 %v1110_v27, %v1111_v40  ;;  %v2275_v52 = vmax.f32 %v1117_v28, %v1118_v41  ;;  %v841_v53 = vrot.slane %v840_v46, 4  ;;  %v2277_v54 = vpop.f32.mrb[13].mxu0  ;;  %v2279_v55 = vpop.f32.mrb[13].mxu1 }
 0x16a   : > { %v848_v56 = vrot.slane %v847_v47, 4  ;;  %v854_v15 = vsel %vm839_vm0, %v2218_v29, -inf  ;;  %v861_v57 = vsel %vm839_vm0, %v519_v43, -inf  ;;  %v653_v60 = vrot.slane %v639_v16, %v2190_v1 }
 0x16b   : > { %v842_v61 = vmax.f32 %v840_v46, %v841_v53  ;;  %v855_v62 = vrot.slane %v854_v15, 4  ;;  %v862_v63 = vrot.slane %v861_v57, 4  ;;  %v654_v3 = vcombine.high %v2203_v17, %v2203_v17 }
 0x16c   : > { %v849_v4 = vmax.f32 %v847_v47, %v848_v56  ;;  %v655_v5 = vcombine.high %v653_v60, %v653_v60  ;;  %v1064_v29 = vsel %vm839_vm0, %v2203_v17, -inf  ;;  %v1078_v6 = vsel %vm839_vm0, %v653_v60, -inf  ;;  %v2293_v7 = vpop.f32.mrb[14].mxu0  ;;  %v2295_v8 = vpop.f32.mrb[14].mxu1 }
 0x16d   : > { %v843_v9 = vrot.slane %v842_v61, 2  ;;  %v856_v16 = vmax.f32 %v854_v15, %v855_v62  ;;  %v863_v10 = vmax.f32 %v861_v57, %v862_v63  ;;  %v1065_v11 = vrot.slane %v1064_v29, 4  ;;  %v2297_v13 = vpop.f32.mrb[15].mxu0  ;;  %v2299_v14 = vpop.f32.mrb[15].mxu1 }
 0x16e   : > { %v850_v20 = vrot.slane %v849_v4, 2  ;;  %v1071_v23 = vsel %vm839_vm0, %v654_v3, -inf  ;;  %v1079_v17 = vrot.slane %v1078_v6, 4  ;;  %v1085_v26 = vsel %vm839_vm0, %v655_v5, -inf }
 0x16f   : > { %v844_v27 = vmax.f32 %v842_v61, %v843_v9  ;;  %v857_v28 = vrot.slane %v856_v16, 2  ;;  %v864_v34 = vrot.slane %v863_v10, 2  ;;  %v1066_v35 = vmax.f32 %v1064_v29, %v1065_v11 }
 0x170   : > { %v851_v37 = vmax.f32 %v849_v4, %v850_v20  ;;  %v1072_v40 = vrot.slane %v1071_v23, 4  ;;  %v1080_v41 = vmax.f32 %v1078_v6, %v1079_v17  ;;  %v1086_v43 = vrot.slane %v1085_v26, 4 }
 0x171   : > { %v845_v46 = vrot.slane %v844_v27, 1  ;;  %v858_v47 = vmax.f32 %v856_v16, %v857_v28  ;;  %v865_v53 = vmax.f32 %v863_v10, %v864_v34  ;;  %v1067_v56 = vrot.slane %v1066_v35, 2 }
 0x172   : > { %v852_v15 = vrot.slane %v851_v37, 1  ;;  %v1073_v57 = vmax.f32 %v1071_v23, %v1072_v40  ;;  %v1081_v60 = vrot.slane %v1080_v41, 2  ;;  %v1087_v62 = vmax.f32 %v1085_v26, %v1086_v43 }
 0x173   : > { %v846_v63 = vmax.f32 %v844_v27, %v845_v46  ;;  %v859_v61 = vrot.slane %v858_v47, 1  ;;  %v866_v3 = vrot.slane %v865_v53, 1  ;;  %v1068_v5 = vmax.f32 %v1066_v35, %v1067_v56 }
 0x174   : > { %v853_v29 = vmax.f32 %v851_v37, %v852_v15  ;;  %v1074_v4 = vrot.slane %v1073_v57, 2  ;;  %v1082_v9 = vmax.f32 %v1080_v41, %v1081_v60  ;;  %v1088_v11 = vrot.slane %v1087_v62, 2 }
 0x175   : > { %v860_v6 = vmax.f32 %v858_v47, %v859_v61  ;;  %v867_v20 = vmax.f32 %v865_v53, %v866_v3  ;;  %v1069_v17 = vrot.slane %v1068_v5, 1  ;;  %v474_v16 = vmax.f32 %v2205_v18, %v2222_v38 }
 0x176   : > { %v1353_v10 = vsel %vm1352_vm1, %v853_v29, %v846_v63  ;;  %v1075_v23 = vmax.f32 %v1073_v57, %v1074_v4  ;;  %v1083_v28 = vrot.slane %v1082_v9, 1  ;;  %v1089_v26 = vmax.f32 %v1087_v62, %v1088_v11 }
 0x177   : > { %v1355_v27 = vsel %vm1354_vm2, %v860_v6, %v1353_v10  ;;  %v1070_v34 = vmax.f32 %v1068_v5, %v1069_v17  ;;  %v554_v35 = vcombine.high %v474_v16, %v474_v16  ;;  %v561_v37 = vrot.slane %v474_v16, %v2190_v1 }
 0x178   : > { %v1357_v40 = vsel %vm1356_vm3, %v867_v20, %v1355_v27  ;;  %v1076_v41 = vrot.slane %v1075_v23, 1  ;;  %v1084_v43 = vmax.f32 %v1082_v9, %v1083_v28  ;;  %v1090_v46 = vrot.slane %v1089_v26, 1 }
 0x179   : > { %v1359_v18 = vsel %vm1358_vm4, %v2242_v12, %v1357_v40  ;;  %v568_v38 = vrot.slane %v554_v35, %v2190_v1  ;;  %v569_v47 = vcombine.high %v561_v37, %v561_v37  ;;  %v924_v53 = vsel %vm839_vm0, %v561_v37, -inf }
 0x17a   : > { %v1361_v56 = vsel %vm1360_vm5, %v2252_v32, %v1359_v18  ;;  %v1077_v15 = vmax.f32 %v1075_v23, %v1076_v41  ;;  %v1091_v57 = vmax.f32 %v1089_v26, %v1090_v46  ;;  %v925_v60 = vrot.slane %v924_v53, 4 }
 0x17b   : > { %v1363_v62 = vsel %vm1362_vm6, %v2254_v33, %v1361_v56  ;;  %v570_v63 = vcombine.high %v568_v38, %v568_v38  ;;  %v931_v61 = vsel %vm839_vm0, %v569_v47, -inf  ;;  %v938_v3 = vsel %vm839_vm0, %v568_v38, -inf }
 0x17c   : > { %v1365_v12 = vsel %vm1364_vm7, %v2260_v42, %v1363_v62  ;;  %v1387_v5 = vsel %vm1352_vm1, %v1077_v15, %v1070_v34  ;;  %v926_v29 = vmax.f32 %v924_v53, %v925_v60  ;;  %v932_v4 = vrot.slane %v931_v61, 4 }
 0x17d   : > { %1423 = vst [vmem:[%s2323_s19] sm:$0xff] %v1365_v12  ;;  %v1388_v32 = vsel %vm1354_vm2, %v1084_v43, %v1387_v5  ;;  %v939_v9 = vrot.slane %v938_v3, 4  ;;  %v945_v33 = vsel %vm839_vm0, %v570_v63, -inf  ;;  %v482_v11 = vmax.f32 %v2207_v19, %v2224_v39 }
 0x17e   : > { %v1389_v6 = vsel %vm1356_vm3, %v1091_v57, %v1388_v32  ;;  %v927_v20 = vrot.slane %v926_v29, 2  ;;  %v933_v42 = vmax.f32 %v931_v61, %v932_v4  ;;  %v946_v17 = vrot.slane %v945_v33, 4 }
 0x17f   : > { %v1390_v16 = vsel %vm1358_vm4, %v2258_v36, %v1389_v6  ;;  %v940_v10 = vmax.f32 %v938_v3, %v939_v9  ;;  %v690_v23 = vcombine.high %v482_v11, %v482_v11  ;;  %v697_v28 = vrot.slane %v482_v11, %v2190_v1 }
 0x180   : > { %v1391_v26 = vsel %vm1360_vm5, %v2271_v50, %v1390_v16  ;;  %v928_v27 = vmax.f32 %v926_v29, %v927_v20  ;;  %v934_v34 = vrot.slane %v933_v42, 2  ;;  %v947_v35 = vmax.f32 %v945_v33, %v946_v17 }
 0x181   : > { %v1392_v19 = vsel %vm1362_vm6, %v2273_v51, %v1391_v26  ;;  %v941_v39 = vrot.slane %v940_v10, 2  ;;  %v704_v37 = vrot.slane %v690_v23, %v2190_v1  ;;  %v705_v40 = vcombine.high %v697_v28, %v697_v28 }
 0x182   : > { %v1393_v36 = vsel %vm1364_vm7, %v2275_v52, %v1392_v19  ;;  %v929_v41 = vrot.slane %v928_v27, 1  ;;  %v935_v43 = vmax.f32 %v933_v42, %v934_v34  ;;  %v948_v46 = vrot.slane %v947_v35, 2 }
 0x183   : > { %1427 = vst [vmem:[%s2323_s19 + $0x20] sm:$0xff] %v1393_v36  ;;  %v942_v18 = vmax.f32 %v940_v10, %v941_v39  ;;  %v706_v38 = vcombine.high %v704_v37, %v704_v37  ;;  %v1148_v50 = vsel %vm839_vm0, %v697_v28, -inf  ;;  %v1155_v47 = vsel %vm839_vm0, %v705_v40, -inf }
 0x184   : > { %v2344_v53 = vmax.f32 %v928_v27, %v929_v41  ;;  %v936_v51 = vrot.slane %v935_v43, 1  ;;  %v949_v56 = vmax.f32 %v947_v35, %v948_v46  ;;  %v1149_v15 = vrot.slane %v1148_v50, 4 }
 0x185   : > { %v943_v57 = vrot.slane %v942_v18, 1  ;;  %v1156_v60 = vrot.slane %v1155_v47, 4  ;;  %v1162_v62 = vsel %vm839_vm0, %v704_v37, -inf  ;;  %v1169_v52 = vsel %vm839_vm0, %v706_v38, -inf }
 0x186   : > { %v2348_v63 = vmax.f32 %v935_v43, %v936_v51  ;;  %v950_v61 = vrot.slane %v949_v56, 1  ;;  %v1150_v3 = vmax.f32 %v1148_v50, %v1149_v15  ;;  %v1163_v12 = vrot.slane %v1162_v62, 4 }
 0x187   : > { %v2350_v5 = vmax.f32 %v942_v18, %v943_v57  ;;  %v1157_v29 = vmax.f32 %v1155_v47, %v1156_v60  ;;  %v1170_v4 = vrot.slane %v1169_v52, 4  ;;  %v473_v32 = vmax.f32 %v2212_v24, %v2230_v44 }
 0x188   : > { %v2354_v9 = vmax.f32 %v949_v56, %v950_v61  ;;  %v1151_v33 = vrot.slane %v1150_v3, 2  ;;  %v1164_v11 = vmax.f32 %v1162_v62, %v1163_v12  ;;  %v481_v6 = vmax.f32 %v2214_v25, %v2232_v45 }
 0x189   : > { %v1158_v20 = vrot.slane %v1157_v29, 2  ;;  %v1171_v42 = vmax.f32 %v1169_v52, %v1170_v4  ;;  %v537_v17 = vcombine.high %v473_v32, %v473_v32  ;;  %v544_v16 = vrot.slane %v473_v32, %v2190_v1 }
 0x18a   : > { %v1152_v10 = vmax.f32 %v1150_v3, %v1151_v33  ;;  %v1165_v23 = vrot.slane %v1164_v11, 2  ;;  %v673_v28 = vcombine.high %v481_v6, %v481_v6  ;;  %v680_v26 = vrot.slane %v481_v6, %v2190_v1 }
 0x18b   : > { %v1159_v27 = vmax.f32 %v1157_v29, %v1158_v20  ;;  %v1172_v34 = vrot.slane %v1171_v42, 2  ;;  %v551_v24 = vrot.slane %v537_v17, %v2190_v1  ;;  %v552_v44 = vcombine.high %v544_v16, %v544_v16 }
 0x18c   : > { %v1153_v35 = vrot.slane %v1152_v10, 1  ;;  %v1166_v19 = vmax.f32 %v1164_v11, %v1165_v23  ;;  %v896_v39 = vsel %vm839_vm0, %v544_v16, -inf  ;;  %v687_v25 = vrot.slane %v673_v28, %v2190_v1 }
 0x18d   : > { %v1160_v45 = vrot.slane %v1159_v27, 1  ;;  %v1173_v37 = vmax.f32 %v1171_v42, %v1172_v34  ;;  %v553_v40 = vcombine.high %v551_v24, %v551_v24  ;;  %v897_v36 = vrot.slane %v896_v39, 4 }
 0x18e   : > { %v2363_v41 = vmax.f32 %v1152_v10, %v1153_v35  ;;  %v1167_v43 = vrot.slane %v1166_v19, 1  ;;  %v903_v46 = vsel %vm839_vm0, %v552_v44, -inf  ;;  %v910_v18 = vsel %vm839_vm0, %v551_v24, -inf }
 0x18f   : > { %v2367_v38 = vmax.f32 %v1159_v27, %v1160_v45  ;;  %v1174_v50 = vrot.slane %v1173_v37, 1  ;;  %v898_v47 = vmax.f32 %v896_v39, %v897_v36  ;;  %v904_v51 = vrot.slane %v903_v46, 4 }
 0x190   : > { %v2369_v56 = vmax.f32 %v1166_v19, %v1167_v43  ;;  %v911_v15 = vrot.slane %v910_v18, 4  ;;  %v917_v57 = vsel %vm839_vm0, %v553_v40, -inf  ;;  %v688_v60 = vcombine.high %v680_v26, %v680_v26 }
 0x191   : > { %v2372_v62 = vmax.f32 %v1173_v37, %v1174_v50  ;;  %v899_v52 = vrot.slane %v898_v47, 2  ;;  %v905_v61 = vmax.f32 %v903_v46, %v904_v51  ;;  %v918_v3 = vrot.slane %v917_v57, 4 }
 0x192   : > { %v912_v12 = vmax.f32 %v910_v18, %v911_v15  ;;  %v689_v29 = vcombine.high %v687_v25, %v687_v25  ;;  %v1120_v4 = vsel %vm839_vm0, %v680_v26, -inf  ;;  %v1127_v32 = vsel %vm839_vm0, %v688_v60, -inf }
 0x193   : > { %v900_v33 = vmax.f32 %v898_v47, %v899_v52  ;;  %v906_v11 = vrot.slane %v905_v61, 2  ;;  %v919_v6 = vmax.f32 %v917_v57, %v918_v3  ;;  %v1121_v20 = vrot.slane %v1120_v4, 4 }
 0x194   : > { %v913_v42 = vrot.slane %v912_v12, 2  ;;  %v1128_v17 = vrot.slane %v1127_v32, 4  ;;  %v1134_v16 = vsel %vm839_vm0, %v687_v25, -inf  ;;  %v1141_v10 = vsel %vm839_vm0, %v689_v29, -inf }
 0x195   : > { %v901_v23 = vrot.slane %v900_v33, 1  ;;  %v907_v28 = vmax.f32 %v905_v61, %v906_v11  ;;  %v920_v27 = vrot.slane %v919_v6, 2  ;;  %v1122_v34 = vmax.f32 %v1120_v4, %v1121_v20 }
 0x196   : > { %v914_v24 = vmax.f32 %v912_v12, %v913_v42  ;;  %v1129_v44 = vmax.f32 %v1127_v32, %v1128_v17  ;;  %v1135_v35 = vrot.slane %v1134_v16, 4  ;;  %v1142_v26 = vrot.slane %v1141_v10, 4 }
 0x197   : > { %v902_v19 = vmax.f32 %v900_v33, %v901_v23  ;;  %v908_v39 = vrot.slane %v907_v28, 1  ;;  %v921_v45 = vmax.f32 %v919_v6, %v920_v27  ;;  %v1123_v37 = vrot.slane %v1122_v34, 2 }
 0x198   : > { %v915_v40 = vrot.slane %v914_v24, 1  ;;  %v1130_v36 = vrot.slane %v1129_v44, 2  ;;  %v1136_v43 = vmax.f32 %v1134_v16, %v1135_v35  ;;  %v1143_v46 = vmax.f32 %v1141_v10, %v1142_v26 }
 0x199   : > { %v909_v18 = vmax.f32 %v907_v28, %v908_v39  ;;  %v922_v25 = vrot.slane %v921_v45, 1  ;;  %v1124_v50 = vmax.f32 %v1122_v34, %v1123_v37  ;;  %v476_v47 = vmax.f32 %v2234_v58, %v2244_v21 }
 0x19a   : > { %v916_v51 = vmax.f32 %v914_v24, %v915_v40  ;;  %v1131_v15 = vmax.f32 %v1129_v44, %v1130_v36  ;;  %v1137_v57 = vrot.slane %v1136_v43, 2  ;;  %v1144_v60 = vrot.slane %v1143_v46, 2 }
 0x19b   : > { %v923_v52 = vmax.f32 %v921_v45, %v922_v25  ;;  %v1366_v61 = vsel %vm1352_vm1, %v909_v18, %v902_v19  ;;  %v1125_v3 = vrot.slane %v1124_v50, 1  ;;  %v588_v12 = vcombine.high %v476_v47, %v476_v47 }
 0x19c   : > { %v1367_v29 = vsel %vm1354_vm2, %v916_v51, %v1366_v61  ;;  %v1132_v4 = vrot.slane %v1131_v15, 1  ;;  %v1138_v32 = vmax.f32 %v1136_v43, %v1137_v57  ;;  %v1145_v33 = vmax.f32 %v1143_v46, %v1144_v60 }
 0x19d   : > { %v1368_v11 = vsel %vm1356_vm3, %v923_v52, %v1367_v29  ;;  %v1126_v6 = vmax.f32 %v1124_v50, %v1125_v3  ;;  %v595_v20 = vrot.slane %v476_v47, %v2190_v1  ;;  %v602_v58 = vrot.slane %v588_v12, %v2190_v1 }
 0x19e   : > { %v1369_v21 = vsel %vm1358_vm4, %v2344_v53, %v1368_v11  ;;  %v1133_v42 = vmax.f32 %v1131_v15, %v1132_v4  ;;  %v1139_v17 = vrot.slane %v1138_v32, 1  ;;  %v1146_v16 = vrot.slane %v1145_v33, 1 }
 0x19f   : > { %v1370_v10 = vsel %vm1360_vm5, %v2348_v63, %v1369_v21  ;;  %v603_v23 = vcombine.high %v595_v20, %v595_v20  ;;  %v604_v28 = vcombine.high %v602_v58, %v602_v58  ;;  %v980_v27 = vsel %vm839_vm0, %v595_v20, -inf }
 0x1a0   : > { %v1371_v34 = vsel %vm1362_vm6, %v2350_v5, %v1370_v10  ;;  %v1140_v24 = vmax.f32 %v1138_v32, %v1139_v17  ;;  %v1147_v44 = vmax.f32 %v1145_v33, %v1146_v16  ;;  %v1394_v35 = vsel %vm1352_vm1, %v1133_v42, %v1126_v6 }
 0x1a1   : > { %v1372_v53 = vsel %vm1364_vm7, %v2354_v9, %v1371_v34  ;;  %v981_v26 = vrot.slane %v980_v27, 4  ;;  %v987_v19 = vsel %vm839_vm0, %v603_v23, -inf  ;;  %v994_v39 = vsel %vm839_vm0, %v602_v58, -inf }
 0x1a2   : > { %1424 = vst [vmem:[%s2323_s19 + $0x8] sm:$0xff] %v1372_v53  ;;  %v1395_v63 = vsel %vm1354_vm2, %v1140_v24, %v1394_v35  ;;  %v988_v45 = vrot.slane %v987_v19, 4  ;;  %v995_v37 = vrot.slane %v994_v39, 4  ;;  %v1001_v40 = vsel %vm839_vm0, %v604_v28, -inf }
 0x1a3   : > { %v1396_v5 = vsel %vm1356_vm3, %v1147_v44, %v1395_v63  ;;  %v982_v36 = vmax.f32 %v980_v27, %v981_v26  ;;  %v1002_v43 = vrot.slane %v1001_v40, 4  ;;  %v484_v9 = vmax.f32 %v2236_v59, %v2246_v22 }
 0x1a4   : > { %v1397_v46 = vsel %vm1358_vm4, %v2363_v41, %v1396_v5  ;;  %v989_v18 = vmax.f32 %v987_v19, %v988_v45  ;;  %v996_v25 = vmax.f32 %v994_v39, %v995_v37  ;;  %v475_v50 = vmax.f32 %v2238_v0, %v2248_v30 }
 0x1a5   : > { %v1398_v47 = vsel %vm1360_vm5, %v2367_v38, %v1397_v46  ;;  %v983_v51 = vrot.slane %v982_v36, 2  ;;  %v1003_v15 = vmax.f32 %v1001_v40, %v1002_v43  ;;  %v724_v57 = vcombine.high %v484_v9, %v484_v9 }
 0x1a6   : > { %v1399_v60 = vsel %vm1362_vm6, %v2369_v56, %v1398_v47  ;;  %v731_v52 = vrot.slane %v484_v9, %v2190_v1  ;;  %v990_v22 = vrot.slane %v989_v18, 2  ;;  %v997_v41 = vrot.slane %v996_v25, 2 }
 0x1a7   : > { %v1400_v59 = vsel %vm1364_vm7, %v2372_v62, %v1399_v60  ;;  %v738_v61 = vrot.slane %v724_v57, %v2190_v1  ;;  %v1004_v0 = vrot.slane %v1003_v15, 2  ;;  %v984_v3 = vmax.f32 %v982_v36, %v983_v51 }
 0x1a8   : > { %1428 = vst [vmem:[%s2323_s19 + $0x28] sm:$0xff] %v1400_v59  ;;  %v739_v30 = vcombine.high %v731_v52, %v731_v52  ;;  %v1204_v38 = vsel %vm839_vm0, %v731_v52, -inf  ;;  %v991_v32 = vmax.f32 %v989_v18, %v990_v22  ;;  %v998_v33 = vmax.f32 %v996_v25, %v997_v41 }
 0x1a9   : > { %v740_v12 = vcombine.high %v738_v61, %v738_v61  ;;  %v1205_v29 = vrot.slane %v1204_v38, 4  ;;  %v1218_v56 = vsel %vm839_vm0, %v738_v61, -inf  ;;  %v1005_v6 = vmax.f32 %v1003_v15, %v1004_v0 }
 0x1aa   : > { %v1211_v4 = vsel %vm839_vm0, %v739_v30, -inf  ;;  %v1219_v20 = vrot.slane %v1218_v56, 4  ;;  %v985_v21 = vrot.slane %v984_v3, 1  ;;  %v571_v23 = vcombine.high %v475_v50, %v475_v50 }
 0x1ab   : > { %v1206_v11 = vmax.f32 %v1204_v38, %v1205_v29  ;;  %v1212_v62 = vrot.slane %v1211_v4, 4  ;;  %v1225_v58 = vsel %vm839_vm0, %v740_v12, -inf  ;;  %v578_v28 = vrot.slane %v475_v50, %v2190_v1 }
 0x1ac   : > { %v1226_v16 = vrot.slane %v1225_v58, 4  ;;  %v1220_v10 = vmax.f32 %v1218_v56, %v1219_v20  ;;  %v483_v27 = vmax.f32 %v2240_v2, %v2250_v31  ;;  %v992_v34 = vrot.slane %v991_v32, 1 }
 0x1ad   : > { %v1207_v42 = vrot.slane %v1206_v11, 2  ;;  %v1213_v17 = vmax.f32 %v1211_v4, %v1212_v62  ;;  %v999_v24 = vrot.slane %v998_v33, 1  ;;  %v2425_v35 = vmax.f32 %v2267_v48, %v2293_v7 }
 0x1ae   : > { %v1006_v53 = vrot.slane %v1005_v6, 1  ;;  %v585_v26 = vrot.slane %v571_v23, %v2190_v1  ;;  %v586_v19 = vcombine.high %v578_v28, %v578_v28  ;;  %v952_v39 = vsel %vm839_vm0, %v578_v28, -inf }
 0x1af   : > { %v1214_v44 = vrot.slane %v1213_v17, 2  ;;  %v2429_v63 = vmax.f32 %v984_v3, %v985_v21  ;;  %v2431_v45 = vmax.f32 %v1206_v11, %v1207_v42  ;;  %v1227_v37 = vmax.f32 %v1225_v58, %v1226_v16 }
 0x1b0   : > { %v953_v40 = vrot.slane %v952_v39, 4  ;;  %v1221_v2 = vrot.slane %v1220_v10, 2  ;;  %v587_v31 = vcombine.high %v585_v26, %v585_v26  ;;  %v959_v5 = vsel %vm839_vm0, %v586_v19, -inf }
 0x1b1   : > { %v966_v36 = vsel %vm839_vm0, %v585_v26, -inf  ;;  %v2435_v48 = vmax.f32 %v991_v32, %v992_v34  ;;  %v2437_v7 = vmax.f32 %v998_v33, %v999_v24  ;;  %v2439_v43 = vmax.f32 %v1213_v17, %v1214_v44 }
 0x1b2   : > { %v954_v9 = vmax.f32 %v952_v39, %v953_v40  ;;  %v2441_v46 = vmax.f32 %v1005_v6, %v1006_v53  ;;  %v960_v18 = vrot.slane %v959_v5, 4  ;;  %v967_v25 = vrot.slane %v966_v36, 4 }
 0x1b3   : > { %v973_v50 = vsel %vm839_vm0, %v587_v31, -inf  ;;  %v1209_v47 = vrot.slane %v2431_v45, 1  ;;  %v1228_v51 = vrot.slane %v1227_v37, 2  ;;  %v2445_v60 = vmax.f32 %v1220_v10, %v1221_v2 }
 0x1b4   : > { %v955_v15 = vrot.slane %v954_v9, 2  ;;  %v974_v57 = vrot.slane %v973_v50, 4  ;;  %v961_v52 = vmax.f32 %v959_v5, %v960_v18  ;;  %v968_v59 = vmax.f32 %v966_v36, %v967_v25 }
 0x1b5   : > { %v707_v22 = vcombine.high %v483_v27, %v483_v27  ;;  %v1216_v41 = vrot.slane %v2439_v43, 1  ;;  %v714_v30 = vrot.slane %v483_v27, %v2190_v1  ;;  %v622_v29 = vcombine.high %v2425_v35, %v2425_v35 }
 0x1b6   : > { %v956_v61 = vmax.f32 %v954_v9, %v955_v15  ;;  %v975_v0 = vmax.f32 %v973_v50, %v974_v57  ;;  %v962_v38 = vrot.slane %v961_v52, 2  ;;  %v969_v3 = vrot.slane %v968_v59, 2 }
 0x1b7   : > { %v721_v12 = vrot.slane %v707_v22, %v2190_v1  ;;  %v722_v32 = vcombine.high %v714_v30, %v714_v30  ;;  %v1176_v33 = vsel %vm839_vm0, %v714_v30, -inf  ;;  %v629_v44 = vrot.slane %v2425_v35, %v2190_v1 }
 0x1b8   : > { %v957_v4 = vrot.slane %v956_v61, 1  ;;  %v976_v56 = vrot.slane %v975_v0, 2  ;;  %v963_v11 = vmax.f32 %v961_v52, %v962_v38  ;;  %v970_v62 = vmax.f32 %v968_v59, %v969_v3 }
 0x1b9   : > { %v723_v6 = vcombine.high %v721_v12, %v721_v12  ;;  %v1177_v20 = vrot.slane %v1176_v33, 4  ;;  %v1183_v42 = vsel %vm839_vm0, %v722_v32, -inf  ;;  %v1190_v17 = vsel %vm839_vm0, %v721_v12, -inf }
 0x1ba   : > { %v958_v58 = vmax.f32 %v956_v61, %v957_v4  ;;  %v977_v21 = vmax.f32 %v975_v0, %v976_v56  ;;  %v964_v16 = vrot.slane %v963_v11, 1  ;;  %v971_v10 = vrot.slane %v970_v62, 1 }
 0x1bb   : > { %v1178_v23 = vmax.f32 %v1176_v33, %v1177_v20  ;;  %v1184_v28 = vrot.slane %v1183_v42, 4  ;;  %v1191_v34 = vrot.slane %v1190_v17, 4  ;;  %v1197_v24 = vsel %vm839_vm0, %v723_v6, -inf }
 0x1bc   : > { %v978_v27 = vrot.slane %v977_v21, 1  ;;  %v965_v53 = vmax.f32 %v963_v11, %v964_v16  ;;  %v972_v26 = vmax.f32 %v970_v62, %v971_v10  ;;  %v1198_v31 = vrot.slane %v1197_v24, 4 }
 0x1bd   : > { %v1179_v19 = vrot.slane %v1178_v23, 2  ;;  %v1185_v39 = vmax.f32 %v1183_v42, %v1184_v28  ;;  %v1192_v2 = vmax.f32 %v1190_v17, %v1191_v34  ;;  %v636_v5 = vrot.slane %v622_v29, %v2190_v1 }
 0x1be   : > { %v979_v40 = vmax.f32 %v977_v21, %v978_v27  ;;  %v1373_v36 = vsel %vm1352_vm1, %v965_v53, %v958_v58  ;;  %v637_v25 = vcombine.high %v629_v44, %v629_v44  ;;  %v1229_v50 = vmax.f32 %v1227_v37, %v1228_v51 }
 0x1bf   : > { %v1180_v9 = vmax.f32 %v1178_v23, %v1179_v19  ;;  %v1186_v18 = vrot.slane %v1185_v39, 2  ;;  %v1374_v15 = vsel %vm1354_vm2, %v972_v26, %v1373_v36  ;;  %v1193_v57 = vrot.slane %v1192_v2, 2 }
 0x1c0   : > { %v1199_v52 = vmax.f32 %v1197_v24, %v1198_v31  ;;  %v1375_v35 = vsel %vm1356_vm3, %v979_v40, %v1374_v15  ;;  %v1036_v61 = vsel %vm839_vm0, %v629_v44, -inf  ;;  %v638_v3 = vcombine.high %v636_v5, %v636_v5 }
 0x1c1   : > { %v1181_v59 = vrot.slane %v1180_v9, 1  ;;  %v1187_v22 = vmax.f32 %v1185_v39, %v1186_v18  ;;  %v1376_v0 = vsel %vm1358_vm4, %v2429_v63, %v1375_v35  ;;  %v1194_v30 = vmax.f32 %v1192_v2, %v1193_v57 }
 0x1c2   : > { %v1200_v38 = vrot.slane %v1199_v52, 2  ;;  %v1377_v37 = vsel %vm1360_vm5, %v2435_v48, %v1376_v0  ;;  %v1037_v12 = vrot.slane %v1036_v61, 4  ;;  %v1043_v29 = vsel %vm839_vm0, %v637_v25, -inf }
 0x1c3   : > { %v1188_v51 = vrot.slane %v1187_v22, 1  ;;  %v1378_v4 = vsel %vm1362_vm6, %v2437_v7, %v1377_v37  ;;  %v1182_v56 = vmax.f32 %v1180_v9, %v1181_v59  ;;  %v1195_v32 = vrot.slane %v1194_v30, 1 }
 0x1c4   : > { %v1201_v33 = vmax.f32 %v1199_v52, %v1200_v38  ;;  %v1379_v63 = vsel %vm1364_vm7, %v2441_v46, %v1378_v4  ;;  %v1044_v62 = vrot.slane %v1043_v29, 4  ;;  %v1050_v6 = vsel %vm839_vm0, %v636_v5, -inf }
 0x1c5   : > { %v1189_v11 = vmax.f32 %v1187_v22, %v1188_v51  ;;  %v1223_v20 = vrot.slane %v2445_v60, 1  ;;  %1425 = vst [vmem:[%s2323_s19 + $0x10] sm:$0xff] %v1379_v63  ;;  %v1196_v48 = vmax.f32 %v1194_v30, %v1195_v32  ;;  %v1051_v21 = vrot.slane %v1050_v6, 4 }
 0x1c6   : > { %v1202_v58 = vrot.slane %v1201_v33, 1  ;;  %v1038_v17 = vmax.f32 %v1036_v61, %v1037_v12  ;;  %v1045_v7 = vmax.f32 %v1043_v29, %v1044_v62  ;;  %v486_v16 = vmax.f32 %v2269_v49, %v2295_v8 }
 0x1c7   : > { %v1401_v42 = vsel %vm1352_vm1, %v1189_v11, %v1182_v56  ;;  %v1210_v46 = vmax.f32 %v2431_v45, %v1209_v47  ;;  %v1230_v10 = vrot.slane %v1229_v50, 1  ;;  %v1052_v27 = vmax.f32 %v1050_v6, %v1051_v21 }
 0x1c8   : > { %v1203_v23 = vmax.f32 %v1201_v33, %v1202_v58  ;;  %v1402_v28 = vsel %vm1354_vm2, %v1196_v48, %v1401_v42  ;;  %v1057_v34 = vsel %vm839_vm0, %v638_v3, -inf  ;;  %v758_v24 = vcombine.high %v486_v16, %v486_v16 }
 0x1c9   : > { %v765_v44 = vrot.slane %v486_v16, %v2190_v1  ;;  %v1217_v53 = vmax.f32 %v2439_v43, %v1216_v41  ;;  %v477_v8 = vmax.f32 %v2277_v54, %v2297_v13  ;;  %v1224_v45 = vmax.f32 %v2445_v60, %v1223_v20 }
 0x1ca   : > { %v1403_v49 = vsel %vm1356_vm3, %v1203_v23, %v1402_v28  ;;  %v1039_v26 = vrot.slane %v1038_v17, 2  ;;  %v1046_v19 = vrot.slane %v1045_v7, 2  ;;  %v1231_v39 = vmax.f32 %v1229_v50, %v1230_v10 }
 0x1cb   : > { %v1404_v47 = vsel %vm1358_vm4, %v1210_v46, %v1403_v49  ;;  %v1058_v2 = vrot.slane %v1057_v34, 4  ;;  %v773_v31 = vcombine.high %v765_v44, %v765_v44  ;;  %v1053_v36 = vrot.slane %v1052_v27, 2 }
 0x1cc   : > { %v1405_v40 = vsel %vm1360_vm5, %v1217_v53, %v1404_v47  ;;  %v772_v43 = vrot.slane %v758_v24, %v2190_v1  ;;  %v1040_v54 = vmax.f32 %v1038_v17, %v1039_v26  ;;  %v1047_v13 = vmax.f32 %v1045_v7, %v1046_v19 }
 0x1cd   : > { %v1406_v5 = vsel %vm1362_vm6, %v1224_v45, %v1405_v40  ;;  %v1260_v60 = vsel %vm839_vm0, %v765_v44, -inf  ;;  %v1059_v9 = vmax.f32 %v1057_v34, %v1058_v2  ;;  %v1267_v18 = vsel %vm839_vm0, %v773_v31, -inf }
 0x1ce   : > { %v1407_v41 = vsel %vm1364_vm7, %v1231_v39, %v1406_v5  ;;  %v605_v25 = vcombine.high %v477_v8, %v477_v8  ;;  %v1054_v50 = vmax.f32 %v1052_v27, %v1053_v36  ;;  %v774_v15 = vcombine.high %v772_v43, %v772_v43 }
 0x1cf   : > { %1429 = vst [vmem:[%s2323_s19 + $0x30] sm:$0xff] %v1407_v41  ;;  %v1261_v57 = vrot.slane %v1260_v60, 4  ;;  %v612_v52 = vrot.slane %v477_v8, %v2190_v1  ;;  %v485_v59 = vmax.f32 %v2279_v55, %v2299_v14  ;;  %v1041_v22 = vrot.slane %v1040_v54, 1 }
 0x1d0   : > { %v619_v35 = vrot.slane %v605_v25, %v2190_v1  ;;  %v1048_v61 = vrot.slane %v1047_v13, 1  ;;  %v1268_v0 = vrot.slane %v1267_v18, 4  ;;  %v1060_v30 = vrot.slane %v1059_v9, 2 }
 0x1d1   : > { %v620_v38 = vcombine.high %v612_v52, %v612_v52  ;;  %v1008_v37 = vsel %vm839_vm0, %v612_v52, -inf  ;;  %v1055_v51 = vrot.slane %v1054_v50, 1  ;;  %v1274_v12 = vsel %vm839_vm0, %v772_v43, -inf }
 0x1d2   : > { %v621_v3 = vcombine.high %v619_v35, %v619_v35  ;;  %v1281_v29 = vsel %vm839_vm0, %v774_v15, -inf  ;;  %v1009_v4 = vrot.slane %v1008_v37, 4  ;;  %v2506_v56 = vmax.f32 %v1260_v60, %v1261_v57 }
 0x1d3   : > { %v1015_v32 = vsel %vm839_vm0, %v620_v38, -inf  ;;  %v1022_v55 = vsel %vm839_vm0, %v619_v35, -inf  ;;  %v2511_v33 = vmax.f32 %v1040_v54, %v1041_v22  ;;  %v2513_v63 = vmax.f32 %v1047_v13, %v1048_v61 }
 0x1d4   : > { %v1029_v14 = vsel %vm839_vm0, %v621_v3, -inf  ;;  %v1269_v11 = vmax.f32 %v1267_v18, %v1268_v0  ;;  %v1010_v62 = vmax.f32 %v1008_v37, %v1009_v4  ;;  %v1275_v6 = vrot.slane %v1274_v12, 4 }
 0x1d5   : > { %v1016_v20 = vrot.slane %v1015_v32, 4  ;;  %v1023_v48 = vrot.slane %v1022_v55, 4  ;;  %v1030_v58 = vrot.slane %v1029_v14, 4  ;;  %v2515_v21 = vmax.f32 %v1054_v50, %v1055_v51 }
 0x1d6   : > { %v1061_v42 = vmax.f32 %v1059_v9, %v1060_v30  ;;  %v1282_v17 = vrot.slane %v1281_v29, 4  ;;  %v1011_v7 = vrot.slane %v1010_v62, 2  ;;  %v1263_v16 = vrot.slane %v2506_v56, 2 }
 0x1d7   : > { %v1017_v46 = vmax.f32 %v1015_v32, %v1016_v20  ;;  %v1024_v10 = vmax.f32 %v1022_v55, %v1023_v48  ;;  %v1031_v23 = vmax.f32 %v1029_v14, %v1030_v58  ;;  %v1270_v28 = vrot.slane %v1269_v11, 2 }
 0x1d8   : > { %v1012_v27 = vmax.f32 %v1010_v62, %v1011_v7  ;;  %v741_v34 = vcombine.high %v485_v59, %v485_v59  ;;  %v748_v24 = vrot.slane %v485_v59, %v2190_v1  ;;  %v1276_v44 = vmax.f32 %v1274_v12, %v1275_v6 }
 0x1d9   : > { %v1018_v53 = vrot.slane %v1017_v46, 2  ;;  %v1025_v49 = vrot.slane %v1024_v10, 2  ;;  %v1032_v8 = vrot.slane %v1031_v23, 2  ;;  %v1283_v5 = vmax.f32 %v1281_v29, %v1282_v17 }
 0x1da   : > { %v1013_v45 = vrot.slane %v1012_v27, 1  ;;  %v755_v47 = vrot.slane %v741_v34, %v2190_v1  ;;  %v756_v26 = vcombine.high %v748_v24, %v748_v24  ;;  %v1232_v19 = vsel %vm839_vm0, %v748_v24, -inf }
 0x1db   : > { %v1019_v39 = vmax.f32 %v1017_v46, %v1018_v53  ;;  %v1026_v40 = vmax.f32 %v1024_v10, %v1025_v49  ;;  %v1033_v2 = vmax.f32 %v1031_v23, %v1032_v8  ;;  %v1233_v31 = vrot.slane %v1232_v19, 4 }
 0x1dc   : > { %v757_v36 = vcombine.high %v755_v47, %v755_v47  ;;  %v1239_v43 = vsel %vm839_vm0, %v756_v26, -inf  ;;  %v1246_v41 = vsel %vm839_vm0, %v755_v47, -inf  ;;  %v1014_v18 = vmax.f32 %v1012_v27, %v1013_v45 }
 0x1dd   : > { %v1020_v54 = vrot.slane %v1019_v39, 1  ;;  %v1027_v13 = vrot.slane %v1026_v40, 1  ;;  %v1034_v60 = vrot.slane %v1033_v2, 1  ;;  %v1234_v9 = vmax.f32 %v1232_v19, %v1233_v31 }
 0x1de   : > { %v1240_v25 = vrot.slane %v1239_v43, 4  ;;  %v1247_v1 = vrot.slane %v1246_v41, 4  ;;  %v1253_v50 = vsel %vm839_vm0, %v757_v36, -inf  ;;  %v1062_v59 = vrot.slane %v1061_v42, 1 }
 0x1df   : > { %v1021_v15 = vmax.f32 %v1019_v39, %v1020_v54  ;;  %v1028_v57 = vmax.f32 %v1026_v40, %v1027_v13  ;;  %v1035_v52 = vmax.f32 %v1033_v2, %v1034_v60  ;;  %v1235_v35 = vrot.slane %v1234_v9, 2 }
 0x1e0   : > { %v1241_v22 = vmax.f32 %v1239_v43, %v1240_v25  ;;  %v1248_v61 = vmax.f32 %v1246_v41, %v1247_v1  ;;  %v1254_v0 = vrot.slane %v1253_v50, 4  ;;  %v1277_v30 = vrot.slane %v1276_v44, 2 }
 0x1e1   : > { %v1284_v38 = vrot.slane %v1283_v5, 2  ;;  %v1380_v3 = vsel %vm1352_vm1, %v1021_v15, %v1014_v18  ;;  %v1236_v37 = vmax.f32 %v1234_v9, %v1235_v35  ;;  %v1264_v32 = vmax.f32 %v2506_v56, %v1263_v16 }
 0x1e2   : > { %v1381_v51 = vsel %vm1354_vm2, %v1028_v57, %v1380_v3  ;;  %v1242_v12 = vrot.slane %v1241_v22, 2  ;;  %v1249_v29 = vrot.slane %v1248_v61, 2  ;;  %v1255_v4 = vmax.f32 %v1253_v50, %v1254_v0 }
 0x1e3   : > { %v1271_v55 = vmax.f32 %v1269_v11, %v1270_v28  ;;  %v1382_v14 = vsel %vm1356_vm3, %v1035_v52, %v1381_v51  ;;  %v1237_v62 = vrot.slane %v1236_v37, 1  ;;  %v1063_v17 = vmax.f32 %v1061_v42, %v1062_v59 }
 0x1e4   : > { %v1383_v6 = vsel %vm1358_vm4, %v2511_v33, %v1382_v14  ;;  %v1243_v20 = vmax.f32 %v1241_v22, %v1242_v12  ;;  %v1250_v48 = vmax.f32 %v1248_v61, %v1249_v29  ;;  %v1256_v58 = vrot.slane %v1255_v4, 2 }
 0x1e5   : > { %v1278_v7 = vmax.f32 %v1276_v44, %v1277_v30  ;;  %v1285_v46 = vmax.f32 %v1283_v5, %v1284_v38  ;;  %v1384_v10 = vsel %vm1360_vm5, %v2513_v63, %v1383_v6  ;;  %v1265_v28 = vrot.slane %v1264_v32, 1 }
 0x1e6   : > { %v1385_v56 = vsel %vm1362_vm6, %v2515_v21, %v1384_v10  ;;  %v1244_v11 = vrot.slane %v1243_v20, 1  ;;  %v1251_v16 = vrot.slane %v1250_v48, 1  ;;  %v1257_v23 = vmax.f32 %v1255_v4, %v1256_v58 }
 0x1e7   : > { %v1272_v27 = vrot.slane %v1271_v55, 1  ;;  %v1386_v33 = vsel %vm1364_vm7, %v1063_v17, %v1385_v56  ;;  %v1238_v34 = vmax.f32 %v1236_v37, %v1237_v62  ;;  %v1279_v53 = vrot.slane %v1278_v7, 1 }
 0x1e8   : > { %1426 = vst [vmem:[%s2323_s19 + $0x18] sm:$0xff] %v1386_v33  ;;  %v1245_v42 = vmax.f32 %v1243_v20, %v1244_v11  ;;  %v1252_v24 = vmax.f32 %v1250_v48, %v1251_v16  ;;  %v1258_v44 = vrot.slane %v1257_v23, 1  ;;  %v1286_v49 = vrot.slane %v1285_v46, 1 }
 0x1e9   : > { %v1266_v8 = vmax.f32 %v1264_v32, %v1265_v28  ;;  %v1273_v47 = vmax.f32 %v1271_v55, %v1272_v27  ;;  %v1280_v19 = vmax.f32 %v1278_v7, %v1279_v53 }
 0x1ea   : > { %v1259_v63 = vmax.f32 %v1257_v23, %v1258_v44  ;;  %v1408_v21 = vsel %vm1352_vm1, %v1245_v42, %v1238_v34  ;;  %v1287_v40 = vmax.f32 %v1285_v46, %v1286_v49 }
 0x1eb   : > { %v1409_v45 = vsel %vm1354_vm2, %v1252_v24, %v1408_v21 }
 0x1ec   : > { %v1410_v26 = vsel %vm1356_vm3, %v1259_v63, %v1409_v45 }
 0x1ed   : > { %v1411_v39 = vsel %vm1358_vm4, %v1266_v8, %v1410_v26 }
 0x1ee   : > { %v1412_v2 = vsel %vm1360_vm5, %v1273_v47, %v1411_v39 }
 0x1ef   : > { %v1413_v31 = vsel %vm1362_vm6, %v1280_v19, %v1412_v2 }
 0x1f0   : > { %v1414_v5 = vsel %vm1364_vm7, %v1287_v40, %v1413_v31 }
 0x1f1   : > { %1430 = vst [vmem:[%s2323_s19 + $0x38] sm:$0xff] %v1414_v5 }
 0x1f2   : > { %1888 = shalt.err (!%p1885_p5)
}
 0x1f3   : > { %s1889_s3 = scalar_lea.hbm %s2546_s5, 1024  ;;  %s1893_s27 = scalar_lea.hbm %s2602_s2, 2048 }
 0x1f4   : > { %p1890_p9 = scmp.ne.s32.totalorder %s2546_s5, %s1889_s3  ;;  %p1894_p3 = scmp.lt.u32.totalorder %s2546_s5, %s2602_s2 }
 0x1f5   : > { %p1895_p7 = scmp.lt.u32.totalorder %s1893_s27, %s1889_s3  ;;  %p1897_p4 = scmp.lt.u32.totalorder %s1889_s3, %s2546_s5 }
 0x1f6   : > { %p1891_p1 = pnand %p1890_p9, %p2085_p10 }
 0x1f7   : > { %p1896_p13 = por %p1895_p7, %p1894_p3 }
 0x1f8   : > { %p1892_p2 = pneg %p1891_p1 }
 0x1f9   : > { %p1898_p6 = por %p1897_p4, %p1896_p13 }
 0x1fb   : > { %p1899_p8 = pnand %p1898_p6, %p1892_p2 }
 0x1fd   : > { %1902 = shalt.err (!%p1899_p8)
}
 0x1fe   : > { %s1969_s17 = smov 128   ;;  %s1970_s19 = smov 8  }
 0x1ff   : > { %1745 = dma.vmem_to_hbm [thread:$0]  (%p2085_p10), %s2548_s6, 1024, %s2546_s5, %s1432_s12, %s1969_s17, %s1969_s17, %s1970_s19  }
 0x200 PF: > { %s1462_s21 = sand.u32 1, %s1941_s9   ;;  %p2620_p12 = scmp.ne.s32.totalorder %s2610_s20, 0 }
 0x201   : > { %p2621_p11 = scmp.ge.s32.totalorder %s1961_s14, 2  ;;  %s1463_s7 = scalar_lea.sflag [#allocation4], %s1462_s21 }
 0x203   : > { %p1756_p0 = pnand %p2621_p11, %p2620_p12 }
 0x205   : > { %1936 = dma.done.wait (!%p1756_p0), %s1463_s7, 1024  }
 0x206   : > { %1938 = vsyncadd (!%p1756_p0), %s1463_s7, 4294966272  ;;  %s19_s14 = sadd.s32 1, %s1961_s14   ;;  %s2622_s9 = smov %s1945_s10 }
 0x207   : > { %p16_p5 = scmp.ge.s32.totalorder %s19_s14, 4   ;;  %s2623_s10 = smov %s1949_s11 }
 0x208   : > { %s2624_s11 = smov %s2094_s28  ;;  %s2625_s12 = smov %s1957_s13 }
 0x209   : > { %s2626_s13 = smov %s2628_s25  ;;  %18 = sbr.rel (!%p16_p5) target bundleno = 7 (0x7), region = 77 }
 0x210   :  { %1468 = vsyncpa [#allocation3], 1 }
 0x211   :  { %1470 = vsyncpa [#allocation3 + $0x1], 1 }
 0x212   :  { %1471 = vsyncpa [#allocation6], 1 }
 0x213   :  { %1472 = vsyncpa [#allocation4], 1 }
 0x214   :  { %1474 = vsyncpa [#allocation4 + $0x1], 1 }

</bundles_post_ra>
